<compile_context>
chip_gen: v5e
topology: v5e:2x2
jax: 0.10.0
libtpu: 0.0.40
codegen_flags: <defaults>
</compile_context>

<pallas_src>
import jax
import jax.numpy as jnp
from jax.experimental import pallas as pl
from jax.experimental.pallas import tpu as pltpu


_MAX_LANES = 1024                  # widest lane-dense minor dim we try
_TARGET_BLOCK_ELEMS = 256 * 1024   # per-quadrant f32 elems per block (~1 MiB)


def _iwt_kernel(x_ref, o_ref):
    # Block: (4, tm, tl).  Butterfly form with the 1/2 scale folded in.
    x1 = x_ref[0]
    x2 = x_ref[1]
    x3 = x_ref[2]
    x4 = x_ref[3]
    s12 = (x1 + x2) * 0.5
    d12 = (x1 - x2) * 0.5
    s34 = (x3 + x4) * 0.5
    d34 = (x3 - x4) * 0.5
    o_ref[0] = d12 - d34   # -> h[:, :, 0::2, 0::2]
    o_ref[1] = d12 + d34   # -> h[:, :, 1::2, 0::2]
    o_ref[2] = s12 - s34   # -> h[:, :, 0::2, 1::2]
    o_ref[3] = s12 + s34   # -> h[:, :, 1::2, 1::2]


def _round_up(x: int, m: int) -> int:
    return ((x + m - 1) // m) * m


def _choose_layout(total: int):
    """Factor total == rows * lanes with lanes a multiple of 128 if possible."""
    divisors = [l for l in range(128, _MAX_LANES + 1, 128) if total % l == 0]
    if not divisors:
        return 1, total                         # fall back: tile along lanes
    dense = [l for l in divisors if (total // l) % 8 == 0]
    lanes = max(dense) if dense else max(divisors)
    return total // lanes, lanes


def _row_tile(rows: int, lanes: int) -> int:
    tm = min(rows, max(8, _TARGET_BLOCK_ELEMS // lanes))
    if tm < rows:
        tm = max(8, (tm // 8) * 8)
    if rows >= 16 and pl.cdiv(rows, tm) < 2:
        # Ensure >= 2 grid steps along the "parallel" axis (v7x has 2 TCs).
        tm = _round_up(pl.cdiv(rows, 2), 8)
    return tm


def _lane_tile(lanes: int) -> int:
    if lanes < 128:
        return lanes                            # full (tiny) minor dim
    tl = min(_TARGET_BLOCK_ELEMS, max(128, (lanes // 128) * 128))
    if lanes > 2 * 128 and pl.cdiv(lanes, tl) < 2:
        tl = _round_up(pl.cdiv(lanes, 2), 128)
    return tl


@jax.jit
def iwt(x: jax.Array) -> jax.Array:
    """Inverse wavelet transform: (4*N, C, H, W) -> (N, C, 2H, 2W) float32."""
    x = x.astype(jnp.float32)
    B, C, H, W = x.shape
    N = B // 4
    if B != 4 * N:                 # mirror the torch slicing (ignore remainder)
        x = x[: 4 * N]
    total = N * C * H * W          # elements per quadrant

    rows, lanes = _choose_layout(total)
    if rows == 1:
        tm, tl = 1, _lane_tile(lanes)
    else:
        tm, tl = _row_tile(rows, lanes), lanes
    grid = (pl.cdiv(rows, tm), pl.cdiv(lanes, tl))

    # Lane-dense view: (4N, C, H, W) -> (4, rows, lanes); free (row-major).
    x_r = x.reshape(4, rows, lanes)

    out = pl.pallas_call(
        _iwt_kernel,
        out_shape=jax.ShapeDtypeStruct((4, rows, lanes), jnp.float32),
        grid_spec=pltpu.PrefetchScalarGridSpec(
            num_scalar_prefetch=0,
            grid=grid,
            in_specs=[pl.BlockSpec((4, tm, tl), lambda i, j: (0, i, j))],
            out_specs=pl.BlockSpec((4, tm, tl), lambda i, j: (0, i, j)),
        ),
        compiler_params=pltpu.CompilerParams(
            dimension_semantics=("parallel", "parallel"),
            vmem_limit_bytes=32 * 1024 * 1024,
        ),
    )(x_r)

    out_flat = out.reshape(4, total)
    a = out_flat[0].reshape(N, C, H, W)   # h[:, :, 0::2, 0::2]
    b = out_flat[1].reshape(N, C, H, W)   # h[:, :, 1::2, 0::2]
    c = out_flat[2].reshape(N, C, H, W)   # h[:, :, 0::2, 1::2]
    d = out_flat[3].reshape(N, C, H, W)   # h[:, :, 1::2, 1::2]

    # Stride-2 spatial interleave back to (N, C, 2H, 2W): one fused XLA pass.
    # TODO(synk): fuse this element-granularity lane interleave into the
    # kernel output to cut HBM traffic from two passes to one.
    row_even = jnp.stack([a, c], axis=-1)         # (N, C, H, W, 2)
    row_odd = jnp.stack([b, d], axis=-1)          # (N, C, H, W, 2)
    h = jnp.stack([row_even, row_odd], axis=3)    # (N, C, H, 2, W, 2)
    return h.reshape(N, C, 2 * H, 2 * W)


def _iwt_ref(x: jax.Array) -> jax.Array:
    # Pure-JAX reference mirroring the PyTorch module (for verification).
    x = x.astype(jnp.float32)
    B, C, H, W = x.shape
    N = B // 4
    x1 = x[0:N] / 2
    x2 = x[N:2 * N] / 2
    x3 = x[2 * N:3 * N] / 2
    x4 = x[3 * N:4 * N] / 2
    h = jnp.zeros((N, C, 2 * H, 2 * W), jnp.float32)
    h = h.at[:, :, 0::2, 0::2].set(x1 - x2 - x3 + x4)
    h = h.at[:, :, 1::2, 0::2].set(x1 - x2 + x3 - x4)
    h = h.at[:, :, 0::2, 1::2].set(x1 + x2 - x3 - x4)
    h = h.at[:, :, 1::2, 1::2].set(x1 + x2 + x3 + x4)
    return h


if __name__ == "__main__":
    key = jax.random.PRNGKey(0)
    # Primary shape implied by the module: in_batch = 4 * out_batch.
    shapes = [
        (8, 4, 16, 16),    # -> (2, 4, 32, 32)   (required small example)
        (16, 8, 32, 32),   # multi-step grid (megacore row split)
        (8, 6, 24, 32),    # row tile does not divide rows (masked edge block)
    ]
    for i, shp in enumerate(shapes):
        xk = jax.random.normal(jax.random.fold_in(key, i), shp,
                               dtype=jnp.float32)
        y = jax.block_until_ready(iwt(xk))
        y_ref = _iwt_ref(xk)
        assert y.shape == y_ref.shape, (y.shape, y_ref.shape)
        assert jnp.allclose(y, y_ref, atol=1e-6, rtol=1e-6), float(
            jnp.max(jnp.abs(y - y_ref)))
    print("KERNEL_OK")
</pallas_src>

<mosaic_0001>
module attributes {stable_mosaic.version = 11 : i64} {
  func.func @_iwt_kernel(%arg0: i32, %arg1: i32, %arg2: memref<4x8x256xf32, #tpu.memory_space<vmem>>, %arg3: memref<4x8x256xf32, #tpu.memory_space<vmem>>) attributes {dimension_semantics = [#tpu.dimension_semantics<parallel>, #tpu.dimension_semantics<parallel>], iteration_bounds = array<i64: 1, 1>, scalar_prefetch = 0 : i64, scratch_operands = 0 : i64, tpu.core_type = #tpu.core_type<tc>, window_params = [{transform_indices = @transform_0, window_bounds = array<i64: 4, 8, 256>}, {transform_indices = @transform_1, window_bounds = array<i64: 4, 8, 256>}]} {
    %c0 = arith.constant 0 : index
    %c0_0 = arith.constant 0 : index
    %c0_1 = arith.constant 0 : index
    %0 = vector.load %arg2[%c0, %c0_0, %c0_1] : memref<4x8x256xf32, #tpu.memory_space<vmem>>, vector<1x8x256xf32>
    %1 = vector.shape_cast %0 : vector<1x8x256xf32> to vector<8x256xf32>
    %c1 = arith.constant 1 : index
    %c0_2 = arith.constant 0 : index
    %c0_3 = arith.constant 0 : index
    %2 = vector.load %arg2[%c1, %c0_2, %c0_3] : memref<4x8x256xf32, #tpu.memory_space<vmem>>, vector<1x8x256xf32>
    %3 = vector.shape_cast %2 : vector<1x8x256xf32> to vector<8x256xf32>
    %c2 = arith.constant 2 : index
    %c0_4 = arith.constant 0 : index
    %c0_5 = arith.constant 0 : index
    %4 = vector.load %arg2[%c2, %c0_4, %c0_5] : memref<4x8x256xf32, #tpu.memory_space<vmem>>, vector<1x8x256xf32>
    %5 = vector.shape_cast %4 : vector<1x8x256xf32> to vector<8x256xf32>
    %c3 = arith.constant 3 : index
    %c0_6 = arith.constant 0 : index
    %c0_7 = arith.constant 0 : index
    %6 = vector.load %arg2[%c3, %c0_6, %c0_7] : memref<4x8x256xf32, #tpu.memory_space<vmem>>, vector<1x8x256xf32>
    %7 = vector.shape_cast %6 : vector<1x8x256xf32> to vector<8x256xf32>
    %8 = arith.addf %1, %3 : vector<8x256xf32>
    %cst = arith.constant 5.000000e-01 : f32
    %9 = vector.broadcast %cst : f32 to vector<8x256xf32>
    %10 = arith.mulf %8, %9 : vector<8x256xf32>
    %11 = arith.subf %1, %3 : vector<8x256xf32>
    %cst_8 = arith.constant 5.000000e-01 : f32
    %12 = vector.broadcast %cst_8 : f32 to vector<8x256xf32>
    %13 = arith.mulf %11, %12 : vector<8x256xf32>
    %14 = arith.addf %5, %7 : vector<8x256xf32>
    %cst_9 = arith.constant 5.000000e-01 : f32
    %15 = vector.broadcast %cst_9 : f32 to vector<8x256xf32>
    %16 = arith.mulf %14, %15 : vector<8x256xf32>
    %17 = arith.subf %5, %7 : vector<8x256xf32>
    %cst_10 = arith.constant 5.000000e-01 : f32
    %18 = vector.broadcast %cst_10 : f32 to vector<8x256xf32>
    %19 = arith.mulf %17, %18 : vector<8x256xf32>
    %20 = arith.subf %13, %19 : vector<8x256xf32>
    %c0_11 = arith.constant 0 : index
    %c0_12 = arith.constant 0 : index
    %c0_13 = arith.constant 0 : index
    %21 = vector.load %arg3[%c0_11, %c0_12, %c0_13] : memref<4x8x256xf32, #tpu.memory_space<vmem>>, vector<1x8x256xf32>
    %22 = vector.shape_cast %21 : vector<1x8x256xf32> to vector<8x256xf32>
    %23 = vector.shape_cast %20 : vector<8x256xf32> to vector<1x8x256xf32>
    tpu.vector_store %arg3[%c0_11, %c0_12, %c0_13], %23 {strides = array<i32>} : memref<4x8x256xf32, #tpu.memory_space<vmem>>, vector<1x8x256xf32>,
    %24 = arith.addf %13, %19 : vector<8x256xf32>
    %c1_14 = arith.constant 1 : index
    %c0_15 = arith.constant 0 : index
    %c0_16 = arith.constant 0 : index
    %25 = vector.load %arg3[%c1_14, %c0_15, %c0_16] : memref<4x8x256xf32, #tpu.memory_space<vmem>>, vector<1x8x256xf32>
    %26 = vector.shape_cast %25 : vector<1x8x256xf32> to vector<8x256xf32>
    %27 = vector.shape_cast %24 : vector<8x256xf32> to vector<1x8x256xf32>
    tpu.vector_store %arg3[%c1_14, %c0_15, %c0_16], %27 {strides = array<i32>} : memref<4x8x256xf32, #tpu.memory_space<vmem>>, vector<1x8x256xf32>,
    %28 = arith.subf %10, %16 : vector<8x256xf32>
    %c2_17 = arith.constant 2 : index
    %c0_18 = arith.constant 0 : index
    %c0_19 = arith.constant 0 : index
    %29 = vector.load %arg3[%c2_17, %c0_18, %c0_19] : memref<4x8x256xf32, #tpu.memory_space<vmem>>, vector<1x8x256xf32>
    %30 = vector.shape_cast %29 : vector<1x8x256xf32> to vector<8x256xf32>
    %31 = vector.shape_cast %28 : vector<8x256xf32> to vector<1x8x256xf32>
    tpu.vector_store %arg3[%c2_17, %c0_18, %c0_19], %31 {strides = array<i32>} : memref<4x8x256xf32, #tpu.memory_space<vmem>>, vector<1x8x256xf32>,
    %32 = arith.addf %10, %16 : vector<8x256xf32>
    %c3_20 = arith.constant 3 : index
    %c0_21 = arith.constant 0 : index
    %c0_22 = arith.constant 0 : index
    %33 = vector.load %arg3[%c3_20, %c0_21, %c0_22] : memref<4x8x256xf32, #tpu.memory_space<vmem>>, vector<1x8x256xf32>
    %34 = vector.shape_cast %33 : vector<1x8x256xf32> to vector<8x256xf32>
    %35 = vector.shape_cast %32 : vector<8x256xf32> to vector<1x8x256xf32>
    tpu.vector_store %arg3[%c3_20, %c0_21, %c0_22], %35 {strides = array<i32>} : memref<4x8x256xf32, #tpu.memory_space<vmem>>, vector<1x8x256xf32>,
    return
  }
  func.func @transform_0(%arg0: i32, %arg1: i32) -> (i32, i32, i32) {
    %c0_i32 = arith.constant 0 : i32
    %c0_i32_0 = arith.constant 0 : i32
    return %c0_i32, %arg0, %arg1 : i32, i32, i32
  }
  func.func @transform_1(%arg0: i32, %arg1: i32) -> (i32, i32, i32) {
    %c0_i32 = arith.constant 0 : i32
    %c0_i32_0 = arith.constant 0 : i32
    return %c0_i32, %arg0, %arg1 : i32, i32, i32
  }
}

</mosaic_0001>

<bundles_post_ra>
// kernel: squeeze.5
= control target key start
LH: loop header
LB: loop body
LE: loop exit
PB: predicated region body
PF: predicated region fallthrough
CT: control target
= control target key end

     0   :  { %s177_s8 = smov 96   ;;  %s178_s9 = smov 112   ;;  %vm3_vm0 = vcmask 130048   ;;  %s328_s0 = inlined_call_operand.vmem [shape: f32[2048], index: 0, kind: input, shape index: {}]   ;;  %s329_s1 = inlined_call_operand.vmem [shape: f32[2,4,16,16,1], index: 1, kind: output, shape index: {}]  }
   0x1   :  { %v30_v0 = vld [vmem:[%s328_s0] sm:$0xff]   ;;  %s179_s10 = smov 80   ;;  %v142_v1 = vld [vmem:[%s328_s0 + $0x8] sm:$0xff]   ;;  %s180_s20 = smov 64  }
   0x2   :  { %31 = vrot.lane.b32.xlu1 %v30_v0, %s177_s8  ;;  %14 = vrot.lane.b32.xlu0 %v30_v0, %s178_s9  ;;  %4 = vst.msk [vmem:[%s329_s1] ss:$8 sm:$0xf] %vm3_vm0, %v30_v0   ;;  %s181_s21 = smov 48   ;;  %s182_s22 = smov 32  }
   0x3   :  { %48 = vrot.lane.b32.xlu2 %v30_v0, %s179_s10  ;;  %5 = vst.msk [vmem:[%s329_s1] ss:$8 sm:$0xf0] %vm3_vm0, %v30_v0   ;;  %s183_s23 = smov 16  }
   0x4   :  { %133 = vst.msk [vmem:[%s329_s1 + $0x40] ss:$8 sm:$0xf] %vm3_vm0, %v142_v1  }
   0x5   :  { %134 = vst.msk [vmem:[%s329_s1 + $0x40] ss:$8 sm:$0xf0] %vm3_vm0, %v142_v1  }
   0xa   :  { %40 = vrot.lane.b32.xlu1 %v142_v1, %s177_s8  ;;  %23 = vrot.lane.b32.xlu0 %v142_v1, %s178_s9 }
   0xb   :  { %57 = vrot.lane.b32.xlu2 %v142_v1, %s179_s10 }
  0x12   :  { %74 = vrot.lane.b32.xlu1 %v142_v1, %s180_s20  ;;  %65 = vrot.lane.b32.xlu0 %v30_v0, %s180_s20 }
  0x13   :  { %82 = vrot.lane.b32.xlu2 %v30_v0, %s181_s21 }
  0x1a   :  { %99 = vrot.lane.b32.xlu1 %v30_v0, %s182_s22  ;;  %91 = vrot.lane.b32.xlu0 %v142_v1, %s181_s21 }
  0x1b   :  { %108 = vrot.lane.b32.xlu2 %v142_v1, %s182_s22 }
  0x22   :  { %125 = vrot.lane.b32.xlu1 %v142_v1, %s183_s23  ;;  %116 = vrot.lane.b32.xlu0 %v30_v0, %s183_s23 }
  0x5d   :  { %v49_v2 = vpop.permute.xlu2 %48  }
  0x5e   :  { %145 = vst.msk [vmem:[%s329_s1 + $0x3] ss:$8 sm:$0xf] %vm3_vm0, %v49_v2  }
  0x5f   :  { %146 = vst.msk [vmem:[%s329_s1 + $0x3] ss:$8 sm:$0xf0] %vm3_vm0, %v49_v2  }
  0x65   :  { %v58_v3 = vpop.permute.xlu2 %57  }
  0x66   :  { %148 = vst.msk [vmem:[%s329_s1 + $0x43] ss:$8 sm:$0xf] %vm3_vm0, %v58_v3  }
  0x67   :  { %149 = vst.msk [vmem:[%s329_s1 + $0x43] ss:$8 sm:$0xf0] %vm3_vm0, %v58_v3  }
  0x6d   :  { %v83_v4 = vpop.permute.xlu2 %82  }
  0x6e   :  { %155 = vst.msk [vmem:[%s329_s1 + $0x5] ss:$8 sm:$0xf] %vm3_vm0, %v83_v4  }
  0x6f   :  { %156 = vst.msk [vmem:[%s329_s1 + $0x5] ss:$8 sm:$0xf0] %vm3_vm0, %v83_v4  }
  0x74   :  { %v32_v5 = vpop.permute.xlu1 %31   ;;  %v15_v6 = vpop.permute.xlu0 %14  }
  0x75   :  { %140 = vst.msk [vmem:[%s329_s1 + $0x2] ss:$8 sm:$0xf] %vm3_vm0, %v32_v5   ;;  %v109_v7 = vpop.permute.xlu2 %108  }
  0x76   :  { %141 = vst.msk [vmem:[%s329_s1 + $0x2] ss:$8 sm:$0xf0] %vm3_vm0, %v32_v5  }
  0x77   :  { %135 = vst.msk [vmem:[%s329_s1 + $0x1] ss:$8 sm:$0xf] %vm3_vm0, %v15_v6  }
  0x78   :  { %136 = vst.msk [vmem:[%s329_s1 + $0x1] ss:$8 sm:$0xf0] %vm3_vm0, %v15_v6  }
  0x79   :  { %163 = vst.msk [vmem:[%s329_s1 + $0x46] ss:$8 sm:$0xf] %vm3_vm0, %v109_v7  }
  0x7a   :  { %164 = vst.msk [vmem:[%s329_s1 + $0x46] ss:$8 sm:$0xf0] %vm3_vm0, %v109_v7  }
  0x7c   :  { %v41_v8 = vpop.permute.xlu1 %40   ;;  %v24_v9 = vpop.permute.xlu0 %23  }
  0x7d   :  { %143 = vst.msk [vmem:[%s329_s1 + $0x42] ss:$8 sm:$0xf] %vm3_vm0, %v41_v8  }
  0x7e   :  { %144 = vst.msk [vmem:[%s329_s1 + $0x42] ss:$8 sm:$0xf0] %vm3_vm0, %v41_v8  }
  0x7f   :  { %138 = vst.msk [vmem:[%s329_s1 + $0x41] ss:$8 sm:$0xf] %vm3_vm0, %v24_v9  }
  0x80   :  { %139 = vst.msk [vmem:[%s329_s1 + $0x41] ss:$8 sm:$0xf0] %vm3_vm0, %v24_v9  }
  0x84   :  { %v75_v10 = vpop.permute.xlu1 %74   ;;  %v66_v11 = vpop.permute.xlu0 %65  }
  0x85   :  { %153 = vst.msk [vmem:[%s329_s1 + $0x44] ss:$8 sm:$0xf] %vm3_vm0, %v75_v10  }
  0x86   :  { %154 = vst.msk [vmem:[%s329_s1 + $0x44] ss:$8 sm:$0xf0] %vm3_vm0, %v75_v10  }
  0x87   :  { %150 = vst.msk [vmem:[%s329_s1 + $0x4] ss:$8 sm:$0xf] %vm3_vm0, %v66_v11  }
  0x88   :  { %151 = vst.msk [vmem:[%s329_s1 + $0x4] ss:$8 sm:$0xf0] %vm3_vm0, %v66_v11  }
  0x8c   :  { %v100_v12 = vpop.permute.xlu1 %99   ;;  %v92_v13 = vpop.permute.xlu0 %91  }
  0x8d   :  { %160 = vst.msk [vmem:[%s329_s1 + $0x6] ss:$8 sm:$0xf] %vm3_vm0, %v100_v12  }
  0x8e   :  { %161 = vst.msk [vmem:[%s329_s1 + $0x6] ss:$8 sm:$0xf0] %vm3_vm0, %v100_v12  }
  0x8f   :  { %158 = vst.msk [vmem:[%s329_s1 + $0x45] ss:$8 sm:$0xf] %vm3_vm0, %v92_v13  }
  0x90   :  { %159 = vst.msk [vmem:[%s329_s1 + $0x45] ss:$8 sm:$0xf0] %vm3_vm0, %v92_v13  }
  0x94   :  { %v126_v14 = vpop.permute.xlu1 %125   ;;  %v117_v15 = vpop.permute.xlu0 %116  }
  0x95   :  { %168 = vst.msk [vmem:[%s329_s1 + $0x47] ss:$8 sm:$0xf] %vm3_vm0, %v126_v14  }
  0x96   :  { %169 = vst.msk [vmem:[%s329_s1 + $0x47] ss:$8 sm:$0xf0] %vm3_vm0, %v126_v14  }
  0x97   :  { %165 = vst.msk [vmem:[%s329_s1 + $0x7] ss:$8 sm:$0xf] %vm3_vm0, %v117_v15  }
  0x98   :  { %166 = vst.msk [vmem:[%s329_s1 + $0x7] ss:$8 sm:$0xf0] %vm3_vm0, %v117_v15  }

// kernel: squeeze.4
= control target key start
LH: loop header
LB: loop body
LE: loop exit
PB: predicated region body
PF: predicated region fallthrough
CT: control target
= control target key end

     0   :  { %s185_s8 = smov 96   ;;  %s186_s9 = smov 112   ;;  %vm3_vm0 = vcmask 130048   ;;  %s358_s0 = inlined_call_operand.vmem [shape: f32[1,8,256], index: 0, kind: input, shape index: {}]   ;;  %s359_s1 = inlined_call_operand.vmem [shape: f32[2,4,16,16,1], index: 1, kind: output, shape index: {}]  }
   0x1   :  { %v36_v0 = vld.sshfl [vmem:[%s358_s0] sm:$0xff pattern:$0xb3a29180]   ;;  %s187_s10 = smov 80   ;;  %s188_s13 = smov 64  }
   0x2   :  { %37 = vrot.lane.b32.xlu1 %v36_v0, %s185_s8  ;;  %20 = vrot.lane.b32.xlu0 %v36_v0, %s186_s9  ;;  %v150_v1 = vld.sshfl [vmem:[%s358_s0 + $0x4] sm:$0xff pattern:$0xb3a29180]   ;;  %s189_s14 = smov 48   ;;  %s190_s15 = smov 32  }
   0x3   :  { %54 = vrot.lane.b32.xlu2 %v36_v0, %s187_s10  ;;  %s191_s16 = smov 16   ;;  %v2_v8 = vld [vmem:[%s358_s0] sm:$0xff]   ;;  %v138_v11 = vld [vmem:[%s358_s0 + $0x8] sm:$0xff]  }
   0x4   :  { %4 = vst.msk [vmem:[%s359_s1] ss:$16 sm:$0x3] %vm3_vm0, %v2_v8  }
   0x5   :  { %5 = vst.msk [vmem:[%s359_s1] ss:$16 sm:$0xc] %vm3_vm0, %v2_v8  }
   0x6   :  { %6 = vst.msk [vmem:[%s359_s1] ss:$16 sm:$0x30] %vm3_vm0, %v2_v8  }
   0x7   :  { %7 = vst.msk [vmem:[%s359_s1] ss:$16 sm:$0xc0] %vm3_vm0, %v2_v8  }
   0x8   :  { %139 = vst.msk [vmem:[%s359_s1 + $0x8] ss:$16 sm:$0x3] %vm3_vm0, %v138_v11  }
   0x9   :  { %140 = vst.msk [vmem:[%s359_s1 + $0x8] ss:$16 sm:$0xc] %vm3_vm0, %v138_v11  }
   0xa   :  { %46 = vrot.lane.b32.xlu1 %v150_v1, %s185_s8  ;;  %29 = vrot.lane.b32.xlu0 %v150_v1, %s186_s9  ;;  %141 = vst.msk [vmem:[%s359_s1 + $0x8] ss:$16 sm:$0x30] %vm3_vm0, %v138_v11  }
   0xb   :  { %63 = vrot.lane.b32.xlu2 %v150_v1, %s187_s10  ;;  %142 = vst.msk [vmem:[%s359_s1 + $0x8] ss:$16 sm:$0xc0] %vm3_vm0, %v138_v11  }
  0x12   :  { %80 = vrot.lane.b32.xlu1 %v150_v1, %s188_s13  ;;  %71 = vrot.lane.b32.xlu0 %v36_v0, %s188_s13 }
  0x13   :  { %88 = vrot.lane.b32.xlu2 %v36_v0, %s189_s14 }
  0x1a   :  { %105 = vrot.lane.b32.xlu1 %v36_v0, %s190_s15  ;;  %97 = vrot.lane.b32.xlu0 %v150_v1, %s189_s14 }
  0x1b   :  { %114 = vrot.lane.b32.xlu2 %v150_v1, %s190_s15 }
  0x22   :  { %131 = vrot.lane.b32.xlu1 %v150_v1, %s191_s16  ;;  %122 = vrot.lane.b32.xlu0 %v36_v0, %s191_s16 }
  0x5d   :  { %v55_v2 = vpop.permute.xlu2 %54  }
  0x5e   :  { %153 = vst.msk [vmem:[%s359_s1 + $0x3] ss:$8 sm:$0xf] %vm3_vm0, %v55_v2  }
  0x5f   :  { %154 = vst.msk [vmem:[%s359_s1 + $0x3] ss:$8 sm:$0xf0] %vm3_vm0, %v55_v2  }
  0x65   :  { %v64_v3 = vpop.permute.xlu2 %63  }
  0x66   :  { %156 = vst.msk [vmem:[%s359_s1 + $0x43] ss:$8 sm:$0xf] %vm3_vm0, %v64_v3  }
  0x67   :  { %157 = vst.msk [vmem:[%s359_s1 + $0x43] ss:$8 sm:$0xf0] %vm3_vm0, %v64_v3  }
  0x6d   :  { %v89_v4 = vpop.permute.xlu2 %88  }
  0x6e   :  { %163 = vst.msk [vmem:[%s359_s1 + $0x5] ss:$8 sm:$0xf] %vm3_vm0, %v89_v4  }
  0x6f   :  { %164 = vst.msk [vmem:[%s359_s1 + $0x5] ss:$8 sm:$0xf0] %vm3_vm0, %v89_v4  }
  0x74   :  { %v38_v5 = vpop.permute.xlu1 %37   ;;  %v21_v6 = vpop.permute.xlu0 %20  }
  0x75   :  { %148 = vst.msk [vmem:[%s359_s1 + $0x2] ss:$8 sm:$0xf] %vm3_vm0, %v38_v5   ;;  %v115_v7 = vpop.permute.xlu2 %114  }
  0x76   :  { %149 = vst.msk [vmem:[%s359_s1 + $0x2] ss:$8 sm:$0xf0] %vm3_vm0, %v38_v5  }
  0x77   :  { %143 = vst.msk [vmem:[%s359_s1 + $0x1] ss:$8 sm:$0xf] %vm3_vm0, %v21_v6  }
  0x78   :  { %144 = vst.msk [vmem:[%s359_s1 + $0x1] ss:$8 sm:$0xf0] %vm3_vm0, %v21_v6  }
  0x79   :  { %171 = vst.msk [vmem:[%s359_s1 + $0x46] ss:$8 sm:$0xf] %vm3_vm0, %v115_v7  }
  0x7a   :  { %172 = vst.msk [vmem:[%s359_s1 + $0x46] ss:$8 sm:$0xf0] %vm3_vm0, %v115_v7  }
  0x7c   :  { %v47_v9 = vpop.permute.xlu1 %46   ;;  %v30_v10 = vpop.permute.xlu0 %29  }
  0x7d   :  { %151 = vst.msk [vmem:[%s359_s1 + $0x42] ss:$8 sm:$0xf] %vm3_vm0, %v47_v9  }
  0x7e   :  { %152 = vst.msk [vmem:[%s359_s1 + $0x42] ss:$8 sm:$0xf0] %vm3_vm0, %v47_v9  }
  0x7f   :  { %146 = vst.msk [vmem:[%s359_s1 + $0x41] ss:$8 sm:$0xf] %vm3_vm0, %v30_v10  }
  0x80   :  { %147 = vst.msk [vmem:[%s359_s1 + $0x41] ss:$8 sm:$0xf0] %vm3_vm0, %v30_v10  }
  0x84   :  { %v81_v12 = vpop.permute.xlu1 %80   ;;  %v72_v13 = vpop.permute.xlu0 %71  }
  0x85   :  { %161 = vst.msk [vmem:[%s359_s1 + $0x44] ss:$8 sm:$0xf] %vm3_vm0, %v81_v12  }
  0x86   :  { %162 = vst.msk [vmem:[%s359_s1 + $0x44] ss:$8 sm:$0xf0] %vm3_vm0, %v81_v12  }
  0x87   :  { %158 = vst.msk [vmem:[%s359_s1 + $0x4] ss:$8 sm:$0xf] %vm3_vm0, %v72_v13  }
  0x88   :  { %159 = vst.msk [vmem:[%s359_s1 + $0x4] ss:$8 sm:$0xf0] %vm3_vm0, %v72_v13  }
  0x8c   :  { %v106_v14 = vpop.permute.xlu1 %105   ;;  %v98_v15 = vpop.permute.xlu0 %97  }
  0x8d   :  { %168 = vst.msk [vmem:[%s359_s1 + $0x6] ss:$8 sm:$0xf] %vm3_vm0, %v106_v14  }
  0x8e   :  { %169 = vst.msk [vmem:[%s359_s1 + $0x6] ss:$8 sm:$0xf0] %vm3_vm0, %v106_v14  }
  0x8f   :  { %166 = vst.msk [vmem:[%s359_s1 + $0x45] ss:$8 sm:$0xf] %vm3_vm0, %v98_v15  }
  0x90   :  { %167 = vst.msk [vmem:[%s359_s1 + $0x45] ss:$8 sm:$0xf0] %vm3_vm0, %v98_v15  }
  0x94   :  { %v132_v16 = vpop.permute.xlu1 %131   ;;  %v123_v17 = vpop.permute.xlu0 %122  }
  0x95   :  { %176 = vst.msk [vmem:[%s359_s1 + $0x47] ss:$8 sm:$0xf] %vm3_vm0, %v132_v16  }
  0x96   :  { %177 = vst.msk [vmem:[%s359_s1 + $0x47] ss:$8 sm:$0xf0] %vm3_vm0, %v132_v16  }
  0x97   :  { %173 = vst.msk [vmem:[%s359_s1 + $0x7] ss:$8 sm:$0xf] %vm3_vm0, %v123_v17  }
  0x98   :  { %174 = vst.msk [vmem:[%s359_s1 + $0x7] ss:$8 sm:$0xf0] %vm3_vm0, %v123_v17  }

// kernel: iwt.1
= control target key start
LH: loop header
LB: loop body
LE: loop exit
PB: predicated region body
PF: predicated region fallthrough
CT: control target
= control target key end

     0   :  { %s128_s0 = inlined_call_operand.vmem [shape: f32[4,8,256], index: 0, kind: input, shape index: {}]   ;;  %s129_s1 = inlined_call_operand.vmem [shape: f32[4,8,256], index: 1, kind: output, shape index: {}]  }
   0x1   :  { %v8_v0 = vld [vmem:[%s128_s0] sm:$0xff]  ;;  %v58_v1 = vld [vmem:[%s128_s0 + $0x10] sm:$0xff]  ;;  %v9_v5 = vld [vmem:[%s128_s0 + $0x8] sm:$0xff] }
   0x2   :  { %v60_v2 = vld [vmem:[%s128_s0 + $0x20] sm:$0xff]  ;;  %v62_v3 = vld [vmem:[%s128_s0 + $0x30] sm:$0xff]  ;;  %v23_v4 = vsub.f32 %v8_v0, %v58_v1  ;;  %v59_v6 = vld [vmem:[%s128_s0 + $0x18] sm:$0xff]  ;;  %v19_v7 = vadd.f32 %v58_v1, %v8_v0 }
   0x3   :  { %v31_v8 = vsub.f32 %v60_v2, %v62_v3  ;;  %v61_v9 = vld [vmem:[%s128_s0 + $0x28] sm:$0xff]  ;;  %v63_v10 = vld [vmem:[%s128_s0 + $0x38] sm:$0xff]  ;;  %v24_v11 = vsub.f32 %v9_v5, %v59_v6  ;;  %v27_v12 = vadd.f32 %v62_v3, %v60_v2  ;;  %v20_v13 = vadd.f32 %v59_v6, %v9_v5 }
   0x4   :  { %v25_v14 = vmul.f32 0.5, %v23_v4  ;;  %v32_v15 = vsub.f32 %v61_v9, %v63_v10  ;;  %v28_v16 = vadd.f32 %v63_v10, %v61_v9  ;;  %v21_v19 = vmul.f32 0.5, %v19_v7 }
   0x5   :  { %v33_v17 = vmul.f32 0.5, %v31_v8  ;;  %v26_v18 = vmul.f32 0.5, %v24_v11  ;;  %v29_v20 = vmul.f32 0.5, %v27_v12  ;;  %v22_v22 = vmul.f32 0.5, %v20_v13 }
   0x6   :  { %v34_v21 = vmul.f32 0.5, %v32_v15  ;;  %v30_v23 = vmul.f32 0.5, %v28_v16 }
   0x7   :  { %v35_v24 = vsub.f32 %v25_v14, %v33_v17  ;;  %v39_v25 = vadd.f32 %v33_v17, %v25_v14  ;;  %v44_v28 = vsub.f32 %v21_v19, %v29_v20  ;;  %v49_v30 = vadd.f32 %v29_v20, %v21_v19 }
   0x8   :  { %v36_v26 = vsub.f32 %v26_v18, %v34_v21  ;;  %v40_v27 = vadd.f32 %v34_v21, %v26_v18  ;;  %v45_v29 = vsub.f32 %v22_v22, %v30_v23  ;;  %v50_v31 = vadd.f32 %v30_v23, %v22_v22 }
   0x9   :  { %37 = vst [vmem:[%s129_s1] sm:$0xff] %v35_v24 }
   0xa   :  { %38 = vst [vmem:[%s129_s1 + $0x8] sm:$0xff] %v36_v26 }
   0xb   :  { %64 = vst [vmem:[%s129_s1 + $0x10] sm:$0xff] %v39_v25 }
   0xc   :  { %65 = vst [vmem:[%s129_s1 + $0x18] sm:$0xff] %v40_v27 }
   0xd   :  { %66 = vst [vmem:[%s129_s1 + $0x20] sm:$0xff] %v44_v28 }
   0xe   :  { %67 = vst [vmem:[%s129_s1 + $0x28] sm:$0xff] %v45_v29 }
   0xf   :  { %68 = vst [vmem:[%s129_s1 + $0x30] sm:$0xff] %v49_v30 }
  0x10   :  { %69 = vst [vmem:[%s129_s1 + $0x38] sm:$0xff] %v50_v31 }

</bundles_post_ra>
